<compile_context>
chip_gen: v6e
topology: v6e:2x2x1
jax: 0.10.0
libtpu: 0.0.40
codegen_flags: <defaults>
</compile_context>

<pallas_src>
import functools
import math

import jax
import jax.numpy as jnp
from jax import lax
from jax.experimental import pallas as pl
from jax.experimental.pallas import tpu as pltpu


def _round_up(x, m):
    return ((x + m - 1) // m) * m


def _vmem_limit_bytes():
    # ~75% of physical VMEM per generation (v5e/v6e: 128 MiB -> 96 MiB, v7x: 64 -> 48).
    try:
        cap = getattr(pltpu.get_tpu_info(), "vmem_capacity_bytes", None)
        if cap:
            return int(cap) * 3 // 4
    except Exception:
        pass
    return 48 * 1024 * 1024  # conservative fallback, safe on v7x's 64 MiB


# ---------------------------------------------------------------------------
# Pass 1 (row tiles): degrees and gc1 feature transform with D^{-1/2} folded in.
#   d[j]   = rsqrt(rowsum_j(B) + 1)          (self-loop added analytically)
#   S1'[j] = d[j] * (x[j] @ W1)              (stored bf16; padded rows exactly 0)
# ---------------------------------------------------------------------------
def _prep_kernel(b_ref, x_ref, w1_ref, d_ref, s1_ref):
    rowsum = jnp.sum(b_ref[...].astype(jnp.float32), axis=1, keepdims=True) + 1.0
    d = lax.rsqrt(rowsum)                                   # (TN, 1); rowsum >= 1
    d_ref[...] = d
    s1 = jnp.dot(x_ref[...], w1_ref[...], preferred_element_type=jnp.float32)
    s1_ref[...] = (d * s1).astype(jnp.bfloat16)


# ---------------------------------------------------------------------------
# Pass 2 (output-row tiles): h = relu(A_hat @ S1 + b1); S2' = d * (h @ W2).
#   (A_hat @ S1)[i,:] = d_i * (sum_j B[j,i] * S1'[j,:] + S1'[i,:])
# The transpose is folded into dot_general (contract over dim 0 of both operands);
# the self-loop tile is sliced from the resident S1' block (no duplicate DMA stream).
# ---------------------------------------------------------------------------
def _gc1_kernel(b_ref, d_ref, s1_ref, b1_ref, w2_ref, s2_ref, *, tn, n_valid):
    row0 = pl.multiple_of(pl.program_id(0) * tn, tn)
    acc = lax.dot_general(b_ref[...], s1_ref[...],
                          dimension_numbers=(((0,), (0,)), ((), ())),
                          preferred_element_type=jnp.float32)      # (TN, HPAD)
    s1_tile = s1_ref[pl.ds(row0, tn), :].astype(jnp.float32)
    d = d_ref[...]                                                 # (TN, 1)
    h = jnp.maximum(d * (acc + s1_tile) + b1_ref[...], 0.0)
    # TODO(synk): F.dropout(p=self.dropout, training=True) not emitted; module is
    # evaluated with training=False (identity).
    s2 = d * jnp.dot(h, w2_ref[...], preferred_element_type=jnp.float32)
    # Zero padded rows so pass 3's contraction over dim 0 can never see garbage.
    row = row0 + lax.broadcasted_iota(jnp.int32, s2.shape, 0)
    s2_ref[...] = jnp.where(row < n_valid, s2, 0.0).astype(jnp.bfloat16)


# ---------------------------------------------------------------------------
# Pass 3 (output-row tiles): o = A_hat @ S2 + b2; out = log_softmax(o, dim=1)
# with padded class lanes masked out before the softmax.
# ---------------------------------------------------------------------------
def _gc2_kernel(b_ref, d_ref, s2_ref, b2_ref, out_ref, *, tn, nclass):
    row0 = pl.multiple_of(pl.program_id(0) * tn, tn)
    acc = lax.dot_general(b_ref[...], s2_ref[...],
                          dimension_numbers=(((0,), (0,)), ((), ())),
                          preferred_element_type=jnp.float32)      # (TN, CPAD)
    s2_tile = s2_ref[pl.ds(row0, tn), :].astype(jnp.float32)
    o = d_ref[...] * (acc + s2_tile) + b2_ref[...]
    col = lax.broadcasted_iota(jnp.int32, o.shape, 1)
    o = jnp.where(col < nclass, o, jnp.float32(-1e30))             # mask padded classes
    m = jnp.max(o, axis=1, keepdims=True)
    z = o - m
    lse = jnp.log(jnp.sum(jnp.exp(z), axis=1, keepdims=True))
    out_ref[...] = (z - lse).astype(out_ref.dtype)


def random_gcn_forward(adj, mask1, mask2, x, w1, b1, w2, b2, *, row_tile=128):
    n, nfeat = x.shape
    nhid = w1.shape[1]
    nclass = w2.shape[1]

    tn = row_tile
    assert tn % 128 == 0, "row_tile must be a multiple of 128"
    np_ = _round_up(n, tn)
    hpad = _round_up(nhid, 128)
    cpad = _round_up(nclass, 128)
    nb = np_ // tn

    f32 = jnp.float32
    bf16 = jnp.bfloat16

    # Single padded copy of the (N,N) data: the masked adjacency in bf16.
    a_masked = (adj.astype(f32) * mask1.astype(f32) * mask2.astype(f32)).astype(bf16)
    b_mat = jnp.zeros((np_, np_), bf16).at[:n, :n].set(a_masked)

    # Small operands: pad rows of x to the tile grid, lane-pad hidden/class dims.
    x_p = jnp.zeros((np_, nfeat), f32).at[:n, :].set(x.astype(f32))
    w1_p = jnp.zeros((nfeat, hpad), f32).at[:, :nhid].set(w1.astype(f32))
    b1_p = jnp.zeros((1, hpad), f32).at[:, :nhid].set(jnp.reshape(b1, (1, -1)).astype(f32))
    w2_p = jnp.zeros((hpad, cpad), f32).at[:nhid, :nclass].set(w2.astype(f32))
    b2_p = jnp.zeros((1, cpad), f32).at[:, :nclass].set(jnp.reshape(b2, (1, -1)).astype(f32))

    cparams = pltpu.CompilerParams(dimension_semantics=("parallel",),
                                   vmem_limit_bytes=_vmem_limit_bytes())

    row_blk = lambda c: pl.BlockSpec((tn, c), lambda i: (i, 0))     # row tile
    col_blk = lambda r: pl.BlockSpec((r, tn), lambda i: (0, i))     # column tile
    full_blk = lambda r, c: pl.BlockSpec((r, c), lambda i: (0, 0))  # resident

    # ---- pass 1: d = rsqrt(rowsum+1),  S1' = d * (x @ W1)  (bf16) ----
    d, s1 = pl.pallas_call(
        _prep_kernel,
        grid=(nb,),
        in_specs=[row_blk(np_), row_blk(nfeat), full_blk(nfeat, hpad)],
        out_specs=(row_blk(1), row_blk(hpad)),
        out_shape=(jax.ShapeDtypeStruct((np_, 1), f32),
                   jax.ShapeDtypeStruct((np_, hpad), bf16)),
        compiler_params=cparams,
    )(b_mat, x_p, w1_p)

    # ---- pass 2: h = relu(A_hat @ S1 + b1);  S2' = d * (h @ W2)  (bf16) ----
    s2 = pl.pallas_call(
        functools.partial(_gc1_kernel, tn=tn, n_valid=n),
        grid=(nb,),
        in_specs=[col_blk(np_), row_blk(1), full_blk(np_, hpad),
                  full_blk(1, hpad), full_blk(hpad, cpad)],
        out_specs=row_blk(cpad),
        out_shape=jax.ShapeDtypeStruct((np_, cpad), bf16),
        compiler_params=cparams,
    )(b_mat, d, s1, b1_p, w2_p)

    # ---- pass 3: out = log_softmax(A_hat @ S2 + b2, dim=1) ----
    out = pl.pallas_call(
        functools.partial(_gc2_kernel, tn=tn, nclass=nclass),
        grid=(nb,),
        in_specs=[col_blk(np_), row_blk(1), full_blk(np_, cpad), full_blk(1, cpad)],
        out_specs=row_blk(cpad),
        out_shape=jax.ShapeDtypeStruct((np_, cpad), f32),
        compiler_params=cparams,
    )(b_mat, d, s2, b2_p)

    return out[:n, :nclass]


def _uniform_init(key, shape, out_features):
    # mirrors pygcn GraphConvolution.reset_parameters: U(-stdv, stdv), stdv = 1/sqrt(out)
    stdv = 1.0 / math.sqrt(out_features)
    return jax.random.uniform(key, shape, minval=-stdv, maxval=stdv, dtype=jnp.float32)


def _reference(adj, m1, m2, x, w1, b1, w2, b2):
    # Plain-JAX transcription of the PyTorch forward (eval mode), all f32.
    a = adj * m1 * m2
    a = a + jnp.eye(a.shape[0], dtype=a.dtype)
    d = lax.rsqrt(jnp.sum(a, axis=1))
    a_hat = d[:, None] * a.T * d[None, :]
    h = jnp.maximum(a_hat @ (x @ w1) + jnp.reshape(b1, (1, -1)), 0.0)
    o = a_hat @ (h @ w2) + jnp.reshape(b2, (1, -1))
    return jax.nn.log_softmax(o, axis=1)


if __name__ == "__main__":
    # Small synthetic problem; N is deliberately not a multiple of the tile and
    # nhid/nclass are not multiples of 128, to exercise the padding paths.
    N, NFEAT, NHID, NCLASS = 300, 48, 32, 7

    key = jax.random.PRNGKey(0)
    k_adj, k_x, k_w1, k_b1, k_w2, k_b2 = jax.random.split(key, 6)

    # deterministic sparse-ish symmetric adjacency
    a_raw = (jax.random.uniform(k_adj, (N, N)) < 0.05).astype(jnp.float32)
    adj = jnp.maximum(a_raw, a_raw.T)

    # generate_adj_mask: 1 where adj != 0 else 0
    mask = jnp.where(adj != 0.0, 1.0, 0.0).astype(jnp.float32)
    adj_mask1_train = mask
    adj_mask2_fixed = mask

    x = jax.random.normal(k_x, (N, NFEAT), dtype=jnp.float32)

    w1 = _uniform_init(k_w1, (NFEAT, NHID), NHID)
    b1 = _uniform_init(k_b1, (1, NHID), NHID)
    w2 = _uniform_init(k_w2, (NHID, NCLASS), NCLASS)
    b2 = _uniform_init(k_b2, (1, NCLASS), NCLASS)

    out = random_gcn_forward(adj, adj_mask1_train, adj_mask2_fixed, x, w1, b1, w2, b2)
    jax.block_until_ready(out)

    assert out.shape == (N, NCLASS)
    assert bool(jnp.all(jnp.isfinite(out)))

    ref = _reference(adj, adj_mask1_train, adj_mask2_fixed, x, w1, b1, w2, b2)
    max_err = float(jnp.max(jnp.abs(out - ref)))
    assert max_err < 0.1, f"mismatch vs reference: max_err={max_err}"

    print("KERNEL_OK")
</pallas_src>

<mosaic_0001>
module attributes {stable_mosaic.version = 11 : i64} {
  func.func @_prep_kernel(%arg0: i32, %arg1: memref<128x384xbf16, #tpu.memory_space<vmem>>, %arg2: memref<128x48xf32, #tpu.memory_space<vmem>>, %arg3: memref<48x128xf32, #tpu.memory_space<vmem>>, %arg4: memref<128x1xf32, #tpu.memory_space<vmem>>, %arg5: memref<128x128xbf16, #tpu.memory_space<vmem>>) attributes {dimension_semantics = [#tpu.dimension_semantics<parallel>], iteration_bounds = array<i64: 3>, scalar_prefetch = 0 : i64, scratch_operands = 0 : i64, tpu.core_type = #tpu.core_type<tc>, window_params = [{transform_indices = @transform_0, window_bounds = array<i64: 128, 384>}, {transform_indices = @transform_1, window_bounds = array<i64: 128, 48>}, {pipeline_mode = #tpu.pipeline_mode<synchronous>, transform_indices = @transform_2, window_bounds = array<i64: 48, 128>}, {transform_indices = @transform_3, window_bounds = array<i64: 128, 1>}, {transform_indices = @transform_4, window_bounds = array<i64: 128, 128>}]} {
    %c0 = arith.constant 0 : index
    %c0_0 = arith.constant 0 : index
    %0 = vector.load %arg1[%c0, %c0_0] : memref<128x384xbf16, #tpu.memory_space<vmem>>, vector<128x384xbf16>
    %1 = arith.extf %0 : vector<128x384xbf16> to vector<128x384xf32>
    %cst = arith.constant dense<0.000000e+00> : vector<128xf32>
    %2 = vector.multi_reduction <add>, %1, %cst [1] : vector<128x384xf32> to vector<128xf32>
    %3 = vector.shape_cast %2 : vector<128xf32> to vector<128x1xf32>
    %cst_1 = arith.constant 1.000000e+00 : f32
    %4 = vector.broadcast %cst_1 : f32 to vector<128x1xf32>
    %5 = arith.addf %3, %4 : vector<128x1xf32>
    %6 = math.rsqrt %5 : vector<128x1xf32>
    %c0_2 = arith.constant 0 : index
    %c0_3 = arith.constant 0 : index
    %7 = vector.load %arg4[%c0_2, %c0_3] : memref<128x1xf32, #tpu.memory_space<vmem>>, vector<128x1xf32>
    tpu.vector_store %arg4[%c0_2, %c0_3], %6 {strides = array<i32>} : memref<128x1xf32, #tpu.memory_space<vmem>>, vector<128x1xf32>,
    %c0_4 = arith.constant 0 : index
    %c0_5 = arith.constant 0 : index
    %8 = vector.load %arg2[%c0_4, %c0_5] : memref<128x48xf32, #tpu.memory_space<vmem>>, vector<128x48xf32>
    %c0_6 = arith.constant 0 : index
    %c0_7 = arith.constant 0 : index
    %9 = vector.load %arg3[%c0_6, %c0_7] : memref<48x128xf32, #tpu.memory_space<vmem>>, vector<48x128xf32>
    %cst_8 = arith.constant dense<0.000000e+00> : vector<128x128xf32>
    %10 = tpu.matmul %8, %9, %cst_8 {dimension_numbers = #tpu.dot_dimension_numbers<[1], [0], [0], [1], [0, 0, 1, 1], [], []>} : vector<128x48xf32>, vector<48x128xf32>, vector<128x128xf32> -> vector<128x128xf32>
    %11 = vector.broadcast %6 : vector<128x1xf32> to vector<128x128xf32>
    %12 = arith.mulf %11, %10 : vector<128x128xf32>
    %13 = arith.truncf %12 : vector<128x128xf32> to vector<128x128xbf16>
    %c0_9 = arith.constant 0 : index
    %c0_10 = arith.constant 0 : index
    %14 = vector.load %arg5[%c0_9, %c0_10] : memref<128x128xbf16, #tpu.memory_space<vmem>>, vector<128x128xbf16>
    tpu.vector_store %arg5[%c0_9, %c0_10], %13 {strides = array<i32>} : memref<128x128xbf16, #tpu.memory_space<vmem>>, vector<128x128xbf16>,
    return
  }
  func.func @transform_0(%arg0: i32) -> (i32, i32) {
    %c0_i32 = arith.constant 0 : i32
    %c0_i32_0 = arith.constant 0 : i32
    return %arg0, %c0_i32 : i32, i32
  }
  func.func @transform_1(%arg0: i32) -> (i32, i32) {
    %c0_i32 = arith.constant 0 : i32
    %c0_i32_0 = arith.constant 0 : i32
    return %arg0, %c0_i32 : i32, i32
  }
  func.func @transform_2(%arg0: i32) -> (i32, i32) {
    %c0_i32 = arith.constant 0 : i32
    %c0_i32_0 = arith.constant 0 : i32
    %c0_i32_1 = arith.constant 0 : i32
    return %c0_i32, %c0_i32_0 : i32, i32
  }
  func.func @transform_3(%arg0: i32) -> (i32, i32) {
    %c0_i32 = arith.constant 0 : i32
    %c0_i32_0 = arith.constant 0 : i32
    return %arg0, %c0_i32 : i32, i32
  }
  func.func @transform_4(%arg0: i32) -> (i32, i32) {
    %c0_i32 = arith.constant 0 : i32
    %c0_i32_0 = arith.constant 0 : i32
    return %arg0, %c0_i32 : i32, i32
  }
}

</mosaic_0001>

<bundles_post_ra>
// kernel: tpu_custom_call.1
= control target key start
LH: loop header
LB: loop body
LE: loop exit
PB: predicated region body
PF: predicated region fallthrough
CT: control target
= control target key end

     0   :  { %10 = vsyncpa [#allocation3], 0  ;;  %s1594_s0 = inlined_call_operand.hbm [shape: bf16[384,384], index: 0, kind: input, shape index: {}]   ;;  %s1595_s1 = inlined_call_operand.vmem [shape: f32[384,48], index: 1, kind: input, shape index: {}]   ;;  %s1596_s2 = inlined_call_operand.vmem [shape: f32[48,128], index: 2, kind: input, shape index: {}]   ;;  %s1597_s3 = inlined_call_operand.vmem [shape: f32[384,1], index: 3, kind: output, shape index: {0}]   ;;  %s1598_s4 = inlined_call_operand.hbm [shape: bf16[384,128], index: 4, kind: output, shape index: {1}]  }
   0x1   :  { %12 = vsyncpa [#allocation3 + $0x1], 0 }
   0x2   :  { %13 = vsyncpa [#allocation4], 0 }
   0x3   :  { %15 = vsyncpa [#allocation4 + $0x1], 0  ;;  %s1286_s15 = smov 0   ;;  %s1288_s16 = smov 0  }
   0x4   :  { %s1290_s17 = smov 0   ;;  %s1292_s18 = smov 0  }
   0x5 LB: > { %s1307_s19 = sadd.s32 4294967295, %s1253_s18   ;;  %s893_s20 = sadd.s32 4294967294, %s1253_s18   ;;  %s1253_s18 = sphi %s1292_s18, %s1611_s18   ;;  %s1249_s17 = sphi %s1290_s17, %s1610_s17   ;;  %s1245_s16 = sphi %s1288_s16, %s1609_s16   ;;  %s1241_s15 = sphi %s1286_s15, %s1608_s15  }
   0x6   : > { %s1311_s21 = sadd.s32 1, %s1253_s18   ;;  %s28_s22 = sadd.s32 1, %s1249_s17 }
   0x7   : > { %s25_s23 = ssub.s32 %s1253_s18, %s1311_s21  ;;  %p35_p0 = scmp.ne.s32.totalorder %s1249_s17, %s1245_s16 }
   0x8   : > { %p26_p1 = scmp.eq.s32.totalorder %s25_s23, 0  ;;  %p36_p2 = scmp.eq.s32.totalorder %s1253_s18, 0 }
   0x9   : > { %p41_p3 = scmp.ne.s32.totalorder %s1245_s16, %s1241_s15  ;;  %p42_p4 = scmp.eq.s32.totalorder %s1307_s19, 0 }
   0xa   : > { %s1323_s24 = scalar_select %p26_p1, %s1249_s17, %s28_s22  }
   0xb   : > { %p37_p5 = por %p36_p2, %p35_p0  ;;  %p1325_p6 = por %p42_p4, %p41_p3 }
   0xc   : > { %p138_p7 = scmp.eq.s32.totalorder %s1307_s19, 2  ;;  %p144_p8 = scmp.eq.s32.totalorder %s893_s20, 2 }
   0xd   : > { %s1601_s25 = scalar_select %p1325_p6, 1, 0 }
   0xe   : > { %p1091_p9 = scmp.lt.s32.totalorder %s1253_s18, 3  ;;  %p1331_p10 = por %p138_p7, %p35_p0 }
   0xf   : > { %p1335_p11 = por %p144_p8, %p41_p3  ;;  %s167_s28 = sand.u32 1, %s1249_s17  }
  0x10   : > { %s1602_s26 = scalar_select %p1331_p10, 1, 0 }
  0x11   : > { %s1603_s27 = scalar_select %p1335_p11, 1, 0 }
  0x12   : > { %s1077_s29 = smul.u32 3072, %s1253_s18  ;;  %p1346_p12 = pnand %p1091_p9, %p37_p5 }
  0x13   : > { %s1076_s30 = smul.u32 192, %s167_s28  ;;  %s1352_s11 = scalar_lea.sflag [#allocation3], %s167_s28 }
  0x14   : > { %s1344_s7 = scalar_lea.hbm %s1594_s0, %s1077_s29  ;;  %p1163_p0 = pneg %p1346_p12 }
  0x15   : > { %s171_s9 = scalar_lea.vmem [#allocation2], %s1076_s30  ;;  %s1161_s12 = scalar_lea.hbm %s1344_s7, 3072 }
  0x16   : > { %s179_s10 = sshll.u32 %s171_s9, 4  ;;  %p1162_p13 = scmp.ne.s32.totalorder %s1344_s7, %s1161_s12  ;;  %s1350_s10 = int_to_ptr.vmem [resolvable:$true] %s179_s10 }
  0x17   : > { %s1166_s20 = scalar_lea.hbm %s1594_s0, 9216  ;;  %p1167_p3 = scmp.lt.s32.totalorder %s1344_s7, %s1594_s0 }
  0x18   : > { %p1164_p1 = pnand %p1163_p0, %p1162_p13  ;;  %p1168_p4 = scmp.lt.s32.totalorder %s1166_s20, %s1161_s12 }
  0x1a   : > { %p1165_p2 = pneg %p1164_p1  ;;  %p1169_p5 = por %p1168_p4, %p1167_p3 }
  0x1c   : > { %p1170_p7 = pnand %p1169_p5, %p1165_p2 }
  0x1e   : > { %1173 = shalt.err (!%p1170_p7)
}
  0x1f   : > { %s1174_s28 = scalar_lea.vmem %s1350_s10, 3072  ;;  %s1255_s29 = smov [#allocation2]  }
  0x20   : > { %p1175_p8 = scmp.ne.s32.totalorder %s1350_s10, %s1174_s28  ;;  %s1179_s30 = sshll.u32 %s1255_s29, 4  ;;  %s1180_s30 = int_to_ptr.vmem [resolvable:$false] %s1179_s30 }
  0x21   : > { %s1181_s5 = scalar_lea.vmem %s1180_s30, 6144  ;;  %p1182_p1 = scmp.lt.s32.totalorder %s1350_s10, %s1180_s30 }
  0x22   : > { %p1177_p9 = pnand %p1175_p8, %p1163_p0  ;;  %p1183_p11 = scmp.lt.s32.totalorder %s1181_s5, %s1174_s28 }
  0x24   : > { %p1178_p13 = pneg %p1177_p9  ;;  %p1184_p10 = por %p1183_p11, %p1182_p1 }
  0x26   : > { %p1185_p6 = pnand %p1184_p10, %p1178_p13 }
  0x28   : > { %1188 = shalt.err (!%p1185_p6)
}
  0x29   : > { %s1256_s6 = smov 192   ;;  %s1257_s9 = smov 12  }
  0x2a   : > { %1086 = dma.hbm_to_vmem [thread:$0]  (!%p1346_p12), %s1344_s7, 3072, %s1350_s10, %s1352_s11, %s1256_s6, %s1256_s6, %s1257_s9  }
  0x2b   : > { %p899_p0 = scmp.ge.s32.totalorder %s1253_s18, 1  ;;  %p196_p2 = scmp.lt.s32.totalorder %s1253_s18, 4 }
  0x2d   : > { %p197_p3 = pnand %p899_p0, %p196_p2 }
  0x2e   : > { %s1376_s12 = sand.u32 (!%p197_p3), 1, %s1245_s16   ;;  %p1605_p6 = scmp.ne.s32.totalorder (!%p197_p3), %s1601_s25, 0 }
  0x2f   : > { %200 = sbr.rel (%p197_p3) target bundleno = 292 (0x124), region = 32  ;;  %s203_s14 = scalar_lea.sflag (!%p197_p3), [#allocation3], %s1376_s12 }
  0x30   : > { %s1078_s13 = smul.u32 (!%p197_p3), 192, %s1376_s12 }
  0x32   : > { %s1380_s20 = scalar_lea.vmem (!%p197_p3), [#allocation2], %s1078_s13 }
  0x34   : > { %1232 = dma.done.wait (%p1605_p6), %s203_s14, 3072  }
  0x35   : > { %1234 = vsyncadd (%p1605_p6), %s203_s14, 4294964224  ;;  %s901_s7 = sshll.u32 %s1307_s19, 4  ;;  %v469_v0 = vld [vmem:[%s1596_s2 + $0x28] sm:$0xff]  ;;  %v468_v1 = vld [vmem:[%s1596_s2 + $0x20] sm:$0xff]  ;;  %vm470_vm0 = vcmask 392192   ;;  %vm431_vm1 = vcmask 7168  }
  0x36   : > { %p243_p10 = scmp.lt.s32.totalorder %s901_s7, 47  ;;  %1028 = vmatprep.subr.mxu0 %v469_v0  ;;  %1064 = vmatprep.subr.mxu1 %v469_v0  ;;  %v467_v2 = vld [vmem:[%s1596_s2 + $0x18] sm:$0xff]  ;;  %v466_v3 = vld [vmem:[%s1596_s2 + $0x10] sm:$0xff]  ;;  %v465_v4 = vld [vmem:[%s1596_s2 + $0x8] sm:$0xff]  ;;  %s958_s28 = sshll.u32 %s1307_s19, 10 }
  0x37   : > { %1029 = vmatpush3.msra.mxu0 %v469_v0  ;;  %1070 = vmatpush3.msra.mxu1 %v469_v0  ;;  %v464_v5 = vld [vmem:[%s1596_s2] sm:$0xff]  ;;  %v259_v6 = vld [vmem:[%s1380_s20 + $0x18] sm:$0xff]  ;;  %v262_v14 = vld [vmem:[%s1380_s20 + $0x14] ss:$24 sps:$4 sm:$0xff]   ;;  %s1550_s19 = scalar_lea.hbm %s1598_s4, %s958_s28  ;;  %s766_s5 = scalar_lea.sflag [#allocation4], %s1376_s12 }
  0x38   : > { %s1613_s7 = smov (!%p243_p10, %s901_s7), 47  ;;  %1030 = vmatprep.subr.mxu0 %v468_v1  ;;  %1065 = vmatprep.subr.mxu1 %v468_v1  ;;  %v260_v7 = vld [vmem:[%s1380_s20 + $0x8] ss:$24 sps:$4 sm:$0xff]   ;;  %v293_v8 = vunpack.c.l.bf16 %v259_v6  ;;  %v294_v9 = vunpack.c.h.bf16 %v259_v6  ;;  %v257_v19 = vld [vmem:[%s1380_s20 + $0xc] sm:$0xff]  ;;  %v298_v24 = vunpack.c.h.bf16 %v262_v14  ;;  %v292_v32 = vunpack.c.l.bf16 %v262_v14  ;;  %v266_v33 = vld [vmem:[%s1380_s20 + $0x38] ss:$12 sps:$4 sm:$0xff]  }
  0x39   : > { %1031 = vmatpush3.msra.mxu0 %v468_v1  ;;  %1071 = vmatpush3.msra.mxu1 %v468_v1  ;;  %s902_s30 = sshll.u32 %s1613_s7, 3  ;;  %v295_v10 = vunpack.c.h.bf16 %v260_v7  ;;  %v255_v11 = vld [vmem:[%s1380_s20] sm:$0xff]  ;;  %v289_v12 = vunpack.c.l.bf16 %v260_v7  ;;  %v290_v25 = vunpack.c.l.bf16 %v257_v19  ;;  %v291_v26 = vunpack.c.h.bf16 %v257_v19  ;;  %v263_v27 = vld [vmem:[%s1380_s20 + $0x30] sm:$0xff]  ;;  %v267_v44 = vld [vmem:[%s1380_s20 + $0x48] sm:$0xff]  ;;  %s900_s7 = sshll.u32 %s1376_s12, 6 }
  0x3a   : > { %1032 = vmatprep.subr.mxu0 %v467_v2  ;;  %1066 = vmatprep.subr.mxu1 %v467_v2  ;;  %s1413_s10 = scalar_lea.vmem %s1595_s1, %s902_s30  ;;  %v261_v13 = vld [vmem:[%s1380_s20 + $0x24] sm:$0xff]  ;;  %v287_v15 = vunpack.c.l.bf16 %v255_v11  ;;  %v288_v16 = vunpack.c.h.bf16 %v255_v11  ;;  %v265_v20 = vld [vmem:[%s1380_s20 + $0x3c] sm:$0xff]  ;;  %v343_v23 = vadd.f32 %v294_v9, %v293_v8  ;;  %v269_v40 = vld [vmem:[%s1380_s20 + $0x54] sm:$0xff]  ;;  %v299_v42 = vunpack.c.l.bf16 %v263_v27  ;;  %s1476_s22 = scalar_lea.vmem %s1597_s3, %s902_s30 }
  0x3b   : > { %1033 = vmatpush3.msra.mxu0 %v467_v2  ;;  %1072 = vmatpush3.msra.mxu1 %v467_v2  ;;  %v296_v17 = vunpack.c.l.bf16 %v261_v13  ;;  %v297_v18 = vunpack.c.h.bf16 %v261_v13  ;;  %v448_v21 = vld [vmem:[%s1413_s10] sm:$0xff]  ;;  %v449_v28 = vld [vmem:[%s1413_s10 + $0x8] sm:$0xff]  ;;  %v302_v34 = vunpack.c.l.bf16 %v265_v20  ;;  %v450_v35 = vld [vmem:[%s1413_s10 + $0x10] sm:$0xff]  ;;  %v339_v38 = vadd.f32 %v291_v26, %v290_v25  ;;  %s1529_s25 = scalar_lea.vmem [#allocation5], %s900_s7  ;;  %p1606_p12 = scmp.ne.s32.totalorder %s1602_s26, 0 }
  0x3c   : > { %1034 = vmatprep.subr.mxu0 %v466_v3  ;;  %1067 = vmatprep.subr.mxu1 %v466_v3  ;;  %v456_v22 = vld [vmem:[%s1413_s10 + $0x40] sm:$0xff]  ;;  %v457_v29 = vld [vmem:[%s1413_s10 + $0x48] sm:$0xff]  ;;  %v335_v30 = vadd.f32 %v288_v16, %v287_v15  ;;  %v458_v36 = vld [vmem:[%s1413_s10 + $0x50] sm:$0xff]  ;;  %v344_v37 = vadd.f32 %v343_v23, %v295_v10  ;;  %v303_v39 = vunpack.c.h.bf16 %v265_v20  ;;  %v300_v43 = vunpack.c.h.bf16 %v263_v27  ;;  %s783_s23 = sshll.u32 %s1529_s25, 4  ;;  %s1258_s9 = smov [#allocation5]   ;;  %s1541_s23 = int_to_ptr.vmem [resolvable:$true] %s783_s23 }
  0x3d   : > { %1035 = vmatpush3.msra.mxu0 %v466_v3  ;;  %1073 = vmatpush3.msra.mxu1 %v466_v3  ;;  %v347_v31 = vadd.f32 %v297_v18, %v296_v17  ;;  %v304_v45 = vunpack.c.h.bf16 %v266_v33  ;;  %v451_v47 = vld [vmem:[%s1413_s10 + $0x18] sm:$0xff]  ;;  %v340_v50 = vadd.f32 %v339_v38, %v292_v32  ;;  %v308_v52 = vunpack.c.l.bf16 %v269_v40  ;;  %v452_v54 = vld [vmem:[%s1413_s10 + $0x20] sm:$0xff]  ;;  %v273_v60 = vld [vmem:[%s1380_s20 + $0x6c] sm:$0xff]  ;;  %s1189_s6 = scalar_lea.vmem %s1541_s23, 1024  ;;  %s1193_s13 = sshll.u32 %s1258_s9, 4  ;;  %s1194_s13 = int_to_ptr.vmem [resolvable:$false] %s1193_s13 }
  0x3e   : > { %1036 = vmatprep.subr.mxu0 %v465_v4  ;;  %1068 = vmatprep.subr.mxu1 %v465_v4  ;;  %v336_v41 = vadd.f32 %v335_v30, %v289_v12  ;;  %v355_v46 = vadd.f32 %v303_v39, %v302_v34  ;;  %v459_v48 = vld [vmem:[%s1413_s10 + $0x58] sm:$0xff]  ;;  %v309_v53 = vunpack.c.h.bf16 %v269_v40  ;;  %v460_v55 = vld [vmem:[%s1413_s10 + $0x60] sm:$0xff]  ;;  %v301_v56 = vunpack.c.l.bf16 %v266_v33  ;;  %v453_v0 = vld [vmem:[%s1413_s10 + $0x28] sm:$0xff]  ;;  %p1190_p11 = scmp.ne.s32.totalorder %s1541_s23, %s1189_s6  ;;  %s1195_s14 = scalar_lea.vmem %s1194_s13, 2048 }
  0x3f   : > { %1037 = vmatpush3.msra.mxu0 %v465_v4  ;;  %1074 = vmatpush3.msra.mxu1 %v465_v4  ;;  %v348_v49 = vadd.f32 %v347_v31, %v298_v24  ;;  %v270_v51 = vld [vmem:[%s1380_s20 + $0x50] ss:$12 sps:$4 sm:$0xff]   ;;  %v351_v57 = vadd.f32 %v300_v43, %v299_v42  ;;  %v305_v58 = vunpack.c.l.bf16 %v267_v44  ;;  %v306_v59 = vunpack.c.h.bf16 %v267_v44  ;;  %v271_v61 = vld [vmem:[%s1380_s20 + $0x60] sm:$0xff]  ;;  %v461_v1 = vld [vmem:[%s1413_s10 + $0x68] sm:$0xff]  ;;  %p1196_p7 = scmp.lt.s32.totalorder %s1541_s23, %s1194_s13  ;;  %p1197_p8 = scmp.lt.s32.totalorder %s1195_s14, %s1189_s6 }
  0x40   : > { %1038 = vmatprep.subr.mxu0 %v464_v5  ;;  %1069 = vmatprep.subr.mxu1 %v464_v5  ;;  %v356_v62 = vadd.f32 %v355_v46, %v304_v45  ;;  %v310_v63 = vunpack.c.h.bf16 %v270_v51  ;;  %v363_v2 = vadd.f32 %v309_v53, %v308_v52  ;;  %v307_v3 = vunpack.c.l.bf16 %v270_v51  ;;  %v277_v6 = vld [vmem:[%s1380_s20 + $0x84] sm:$0xff]  ;;  %v454_v7 = vld [vmem:[%s1413_s10 + $0x30] sm:$0xff]  ;;  %v275_v14 = vld [vmem:[%s1380_s20 + $0x78] sm:$0xff]  ;;  %p1191_p4 = pnand %p1190_p11, %p1606_p12 }
  0x41   : > { %1039 = vmatpush3.msra.mxu0 %v464_v5  ;;  %1075 = vmatpush3.msra.mxu1 %v464_v5  ;;  %v314_v4 = vunpack.c.l.bf16 %v273_v60  ;;  %v315_v5 = vunpack.c.h.bf16 %v273_v60  ;;  %v462_v8 = vld [vmem:[%s1413_s10 + $0x70] sm:$0xff]  ;;  %v352_v9 = vadd.f32 %v351_v57, %v301_v56  ;;  %v359_v10 = vadd.f32 %v306_v59, %v305_v58  ;;  %v455_v17 = vld [vmem:[%s1413_s10 + $0x38] sm:$0xff]  ;;  %v278_v23 = vld [vmem:[%s1380_s20 + $0x80] ss:$12 sps:$4 sm:$0xff]   ;;  %p1198_p9 = por %p1197_p8, %p1196_p7 }
  0x42   : > { %1040 = vmatprep.mubr.msk.f32.mxu0 %vm470_vm0, %v448_v21  ;;  %1052 = vmatprep.mubr.msk.f32.mxu1 %vm470_vm0, %v456_v22  ;;  %v274_v11 = vld [vmem:[%s1380_s20 + $0x68] ss:$12 sps:$4 sm:$0xff]   ;;  %v311_v12 = vunpack.c.l.bf16 %v271_v61  ;;  %v312_v13 = vunpack.c.h.bf16 %v271_v61  ;;  %v320_v15 = vunpack.c.l.bf16 %v277_v6  ;;  %v321_v16 = vunpack.c.h.bf16 %v277_v6  ;;  %v463_v18 = vld [vmem:[%s1413_s10 + $0x78] sm:$0xff]  ;;  %p1192_p5 = pneg %p1191_p4 }
  0x43   : > { %1041 = vmatmul.mubr.msk.f32.vlgmr.msra.gmra.mxu0 %vm470_vm0, %v449_v28  ;;  %1053 = vmatmul.mubr.msk.f32.vlgmr.msra.gmra.mxu1 %vm470_vm0, %v457_v29  ;;  %v364_v19 = vadd.f32 %v363_v2, %v310_v63  ;;  %v316_v20 = vunpack.c.h.bf16 %v274_v11  ;;  %v371_v21 = vadd.f32 %v315_v5, %v314_v4  ;;  %v313_v22 = vunpack.c.l.bf16 %v274_v11  ;;  %v281_v28 = vld [vmem:[%s1380_s20 + $0x9c] sm:$0xff]  ;;  %v279_v29 = vld [vmem:[%s1380_s20 + $0x90] sm:$0xff]  ;;  %v282_v34 = vld [vmem:[%s1380_s20 + $0x98] ss:$12 sps:$4 sm:$0xff]  }
  0x44   : > { %1043 = vmatprep.mubr.msk.f32.mxu0 %vm470_vm0, %v450_v35  ;;  %1055 = vmatprep.mubr.msk.f32.mxu1 %vm470_vm0, %v458_v36  ;;  %v360_v24 = vadd.f32 %v359_v10, %v307_v3  ;;  %v367_v25 = vadd.f32 %v312_v13, %v311_v12  ;;  %v317_v26 = vunpack.c.l.bf16 %v275_v14  ;;  %v318_v27 = vunpack.c.h.bf16 %v275_v14  ;;  %v283_v42 = vld [vmem:[%s1380_s20 + $0xa8] sm:$0xff]  ;;  %v286_v51 = vld [vmem:[%s1380_s20 + $0xb0] ss:$12 sps:$4 sm:$0xff]   ;;  %p1199_p13 = pnand %p1198_p9, %p1192_p5 }
  0x45   : > { %345 = vadd.xlane.f32.xlu1 %v344_v37  ;;  %337 = vadd.xlane.f32.xlu0 %v336_v41  ;;  %v322_v30 = vunpack.c.h.bf16 %v278_v23  ;;  %v379_v31 = vadd.f32 %v321_v16, %v320_v15  ;;  %v372_v32 = vadd.f32 %v371_v21, %v316_v20  ;;  %v319_v33 = vunpack.c.l.bf16 %v278_v23  ;;  %v285_v41 = vld [vmem:[%s1380_s20 + $0xb4] sm:$0xff] }
  0x46   : > { %v326_v35 = vunpack.c.l.bf16 %v281_v28  ;;  %v327_v36 = vunpack.c.h.bf16 %v281_v28  ;;  %v368_v37 = vadd.f32 %v367_v25, %v313_v22  ;;  %v375_v38 = vadd.f32 %v318_v27, %v317_v26 }
  0x47   : > { %1044 = vmatmul.mubr.msk.f32.gmra.mxu0 %vm470_vm0, %v451_v47  ;;  %1056 = vmatmul.mubr.msk.f32.gmra.mxu1 %vm470_vm0, %v459_v48  ;;  %v323_v39 = vunpack.c.l.bf16 %v279_v29  ;;  %v324_v40 = vunpack.c.h.bf16 %v279_v29  ;;  %v380_v43 = vadd.f32 %v379_v31, %v322_v30  ;;  %v328_v44 = vunpack.c.h.bf16 %v282_v34 }
  0x48   : > { %1046 = vmatprep.mubr.msk.f32.mxu0 %vm470_vm0, %v452_v54  ;;  %1058 = vmatprep.mubr.msk.f32.mxu1 %vm470_vm0, %v460_v55  ;;  %v387_v45 = vadd.f32 %v327_v36, %v326_v35  ;;  %v325_v46 = vunpack.c.l.bf16 %v282_v34  ;;  %v332_v47 = vunpack.c.l.bf16 %v285_v41  ;;  %v333_v48 = vunpack.c.h.bf16 %v285_v41 }
  0x49   : > { %349 = vadd.xlane.f32.xlu1 %v348_v49  ;;  %341 = vadd.xlane.f32.xlu0 %v340_v50  ;;  %v376_v49 = vadd.f32 %v375_v38, %v319_v33  ;;  %v383_v50 = vadd.f32 %v324_v40, %v323_v39  ;;  %v329_v52 = vunpack.c.l.bf16 %v283_v42  ;;  %v330_v53 = vunpack.c.h.bf16 %v283_v42 }
  0x4a   : > { %v388_v54 = vadd.f32 %v387_v45, %v328_v44  ;;  %v334_v55 = vunpack.c.h.bf16 %v286_v51  ;;  %v395_v57 = vadd.f32 %v333_v48, %v332_v47  ;;  %v331_v58 = vunpack.c.l.bf16 %v286_v51 }
  0x4b   : > { %1047 = vmatmul.mubr.msk.f32.gmra.mxu0 %vm470_vm0, %v453_v0  ;;  %1059 = vmatmul.mubr.msk.f32.gmra.mxu1 %vm470_vm0, %v461_v1  ;;  %v384_v56 = vadd.f32 %v383_v50, %v325_v46  ;;  %v391_v59 = vadd.f32 %v330_v53, %v329_v52 }
  0x4c   : > { %1049 = vmatprep.mubr.msk.f32.mxu0 %vm470_vm0, %v454_v7  ;;  %1061 = vmatprep.mubr.msk.f32.mxu1 %vm470_vm0, %v462_v8  ;;  %v396_v60 = vadd.f32 %v395_v57, %v334_v55 }
  0x4d   : > { %357 = vadd.xlane.f32.xlu1 %v356_v62  ;;  %353 = vadd.xlane.f32.xlu0 %v352_v9  ;;  %v392_v61 = vadd.f32 %v391_v59, %v331_v58 }
  0x4f   : > { %1050 = vmatmul.mubr.msk.f32.gmra.mxu0 %vm470_vm0, %v455_v17  ;;  %1062 = vmatmul.mubr.msk.f32.gmra.mxu1 %vm470_vm0, %v463_v18 }
  0x51   : > { %365 = vadd.xlane.f32.xlu1 %v364_v19  ;;  %361 = vadd.xlane.f32.xlu0 %v360_v24 }
  0x55   : > { %373 = vadd.xlane.f32.xlu1 %v372_v32  ;;  %369 = vadd.xlane.f32.xlu0 %v368_v37 }
  0x59   : > { %381 = vadd.xlane.f32.xlu1 %v380_v43  ;;  %377 = vadd.xlane.f32.xlu0 %v376_v49 }
  0x5d   : > { %389 = vadd.xlane.f32.xlu1 %v388_v54  ;;  %385 = vadd.xlane.f32.xlu0 %v384_v56 }
  0x61   : > { %397 = vadd.xlane.f32.xlu1 %v396_v60  ;;  %393 = vadd.xlane.f32.xlu0 %v392_v61 }
  0xce   : > { %v346_v62 = vpop.xlane.xlu1 %345  ;;  %v338_v63 = vpop.xlane.xlu0 %337 }
  0xcf   : > { %v401_v0 = vadd.f32 1.0, %v346_v62  ;;  %v399_v1 = vadd.f32 1.0, %v338_v63 }
  0xd1   : > { %1129 = vrsqrt.f32 %v401_v0 }
  0xd2   : > { %1131 = vrsqrt.f32 %v399_v1  ;;  %v350_v2 = vpop.xlane.xlu1 %349  ;;  %v342_v3 = vpop.xlane.xlu0 %341 }
  0xd3   : > { %v402_v4 = vadd.f32 1.0, %v350_v2  ;;  %v400_v5 = vadd.f32 1.0, %v342_v3 }
  0xd5   : > { %1133 = vrsqrt.f32 %v402_v4 }
  0xd6   : > { %1135 = vrsqrt.f32 %v400_v5  ;;  %v358_v6 = vpop.xlane.xlu1 %357  ;;  %v354_v7 = vpop.xlane.xlu0 %353 }
  0xd7   : > { %v404_v8 = vadd.f32 1.0, %v358_v6  ;;  %v403_v9 = vadd.f32 1.0, %v354_v7 }
  0xd9   : > { %1137 = vrsqrt.f32 %v404_v8 }
  0xda   : > { %1139 = vrsqrt.f32 %v403_v9  ;;  %v366_v10 = vpop.xlane.xlu1 %365  ;;  %v362_v11 = vpop.xlane.xlu0 %361 }
  0xdb   : > { %v406_v12 = vadd.f32 1.0, %v366_v10  ;;  %v405_v13 = vadd.f32 1.0, %v362_v11 }
  0xdd   : > { %1141 = vrsqrt.f32 %v406_v12 }
  0xde   : > { %v1478_v14 = vpop.eup %1129  ;;  %1143 = vrsqrt.f32 %v405_v13  ;;  %v374_v15 = vpop.xlane.xlu1 %373 }
  0xdf   : > { %v370_v16 = vpop.xlane.xlu0 %369  ;;  %v1132_v17 = vpop.eup %1131  ;;  %434 = vst.msk [vmem:[%s1476_s22 + $0x10] sm:$0xff] %vm431_vm1, %v1478_v14  ;;  %v408_v18 = vadd.f32 1.0, %v374_v15 }
  0xe0   : > { %v407_v19 = vadd.f32 1.0, %v370_v16  ;;  %432 = vst.msk [vmem:[%s1476_s22] sm:$0xff] %vm431_vm1, %v1132_v17 }
  0xe1   : > { %1145 = vrsqrt.f32 %v408_v18 }
  0xe2   : > { %v1485_v20 = vpop.eup %1133  ;;  %1147 = vrsqrt.f32 %v407_v19  ;;  %v382_v21 = vpop.xlane.xlu1 %381 }
  0xe3   : > { %v378_v22 = vpop.xlane.xlu0 %377  ;;  %v1136_v23 = vpop.eup %1135  ;;  %435 = vst.msk [vmem:[%s1476_s22 + $0x18] sm:$0xff] %vm431_vm1, %v1485_v20  ;;  %v410_v24 = vadd.f32 1.0, %v382_v21 }
  0xe4   : > { %v409_v25 = vadd.f32 1.0, %v378_v22  ;;  %433 = vst.msk [vmem:[%s1476_s22 + $0x8] sm:$0xff] %vm431_vm1, %v1136_v23 }
  0xe5   : > { %1149 = vrsqrt.f32 %v410_v24 }
  0xe6   : > { %v1492_v26 = vpop.eup %1137  ;;  %1151 = vrsqrt.f32 %v409_v25  ;;  %v390_v27 = vpop.xlane.xlu1 %389 }
  0xe7   : > { %v386_v28 = vpop.xlane.xlu0 %385  ;;  %v1494_v29 = vpop.eup %1139  ;;  %437 = vst.msk [vmem:[%s1476_s22 + $0x28] sm:$0xff] %vm431_vm1, %v1492_v26  ;;  %v412_v30 = vadd.f32 1.0, %v390_v27 }
  0xe8   : > { %v411_v31 = vadd.f32 1.0, %v386_v28  ;;  %436 = vst.msk [vmem:[%s1476_s22 + $0x20] sm:$0xff] %vm431_vm1, %v1494_v29 }
  0xe9   : > { %1153 = vrsqrt.f32 %v412_v30 }
  0xea   : > { %v1502_v32 = vpop.eup %1141  ;;  %1155 = vrsqrt.f32 %v411_v31  ;;  %v398_v33 = vpop.xlane.xlu1 %397 }
  0xeb   : > { %v394_v34 = vpop.xlane.xlu0 %393  ;;  %v1504_v35 = vpop.eup %1143  ;;  %439 = vst.msk [vmem:[%s1476_s22 + $0x38] sm:$0xff] %vm431_vm1, %v1502_v32  ;;  %v414_v36 = vadd.f32 1.0, %v398_v33 }
  0xec   : > { %v413_v37 = vadd.f32 1.0, %v394_v34  ;;  %438 = vst.msk [vmem:[%s1476_s22 + $0x30] sm:$0xff] %vm431_vm1, %v1504_v35 }
  0xed   : > { %1157 = vrsqrt.f32 %v414_v36 }
  0xee   : > { %v1146_v38 = vpop.eup %1145  ;;  %1159 = vrsqrt.f32 %v413_v37 }
  0xef   : > { %v1148_v39 = vpop.eup %1147  ;;  %441 = vst.msk [vmem:[%s1476_s22 + $0x48] sm:$0xff] %vm431_vm1, %v1146_v38 }
  0xf0   : > { %440 = vst.msk [vmem:[%s1476_s22 + $0x40] sm:$0xff] %vm431_vm1, %v1148_v39 }
  0xf2   : > { %v1150_v40 = vpop.eup %1149 }
  0xf3   : > { %v1152_v41 = vpop.eup %1151  ;;  %443 = vst.msk [vmem:[%s1476_s22 + $0x58] sm:$0xff] %vm431_vm1, %v1150_v40 }
  0xf4   : > { %442 = vst.msk [vmem:[%s1476_s22 + $0x50] sm:$0xff] %vm431_vm1, %v1152_v41 }
  0xf6   : > { %v1154_v42 = vpop.eup %1153 }
  0xf7   : > { %v1156_v43 = vpop.eup %1155  ;;  %445 = vst.msk [vmem:[%s1476_s22 + $0x68] sm:$0xff] %vm431_vm1, %v1154_v42 }
  0xf8   : > { %444 = vst.msk [vmem:[%s1476_s22 + $0x60] sm:$0xff] %vm431_vm1, %v1156_v43 }
  0xfa   : > { %v1158_v44 = vpop.eup %1157 }
  0xfb   : > { %v1160_v45 = vpop.eup %1159  ;;  %447 = vst.msk [vmem:[%s1476_s22 + $0x78] sm:$0xff] %vm431_vm1, %v1158_v44 }
  0xfc   : > { %446 = vst.msk [vmem:[%s1476_s22 + $0x70] sm:$0xff] %vm431_vm1, %v1160_v45 }
 0x103   : > { %v1042_v46 = vpop.f32.mrf.mxu0  ;;  %v1054_v47 = vpop.f32.mrf.mxu1 }
 0x104   : > { %v665_v50 = vmul.f32 %v1136_v23, %v1042_v46  ;;  %v673_v51 = vmul.f32 %v1146_v38, %v1054_v47 }
 0x105   : > { %v585_v48 = vpop.f32.mrf.mxu0  ;;  %v625_v49 = vpop.f32.mrf.mxu1 }
 0x106   : > { %v664_v52 = vmul.f32 %v1132_v17, %v585_v48  ;;  %v672_v53 = vmul.f32 %v1148_v39, %v625_v49 }
 0x107   : > { %v1045_v54 = vpop.f32.mrf.mxu0  ;;  %v1057_v55 = vpop.f32.mrf.mxu1 }
 0x108   : > { %v962_v56 = vpack.c.bf16 %v665_v50, %v664_v52  ;;  %v982_v57 = vpack.c.bf16 %v673_v51, %v672_v53  ;;  %v667_v60 = vmul.f32 %v1485_v20, %v1045_v54  ;;  %v675_v61 = vmul.f32 %v1150_v40, %v1057_v55 }
 0x109   : > { %v595_v58 = vpop.f32.mrf.mxu0  ;;  %v635_v59 = vpop.f32.mrf.mxu1 }
 0x10a   : > { %963 = vst [vmem:[%s1529_s25] sm:$0xff] %v962_v56   ;;  %1002 = vst [vmem:[%s1529_s25 + $0x20] sm:$0xff] %v982_v57   ;;  %v666_v62 = vmul.f32 %v1478_v14, %v595_v58  ;;  %v674_v63 = vmul.f32 %v1152_v41, %v635_v59 }
 0x10b   : > { %v1048_v0 = vpop.f32.mrf.mxu0  ;;  %v1060_v1 = vpop.f32.mrf.mxu1 }
 0x10c   : > { %v967_v2 = vpack.c.bf16 %v667_v60, %v666_v62  ;;  %v987_v3 = vpack.c.bf16 %v675_v61, %v674_v63  ;;  %v669_v6 = vmul.f32 %v1492_v26, %v1048_v0  ;;  %v677_v7 = vmul.f32 %v1154_v42, %v1060_v1 }
 0x10d   : > { %v605_v4 = vpop.f32.mrf.mxu0  ;;  %v645_v5 = vpop.f32.mrf.mxu1 }
 0x10e   : > { %999 = vst [vmem:[%s1529_s25 + $0x8] sm:$0xff] %v967_v2   ;;  %1003 = vst [vmem:[%s1529_s25 + $0x28] sm:$0xff] %v987_v3   ;;  %v668_v8 = vmul.f32 %v1494_v29, %v605_v4  ;;  %v676_v9 = vmul.f32 %v1156_v43, %v645_v5 }
 0x10f   : > { %v1051_v10 = vpop.f32.mrf.mxu0  ;;  %v1063_v11 = vpop.f32.mrf.mxu1 }
 0x110   : > { %v972_v12 = vpack.c.bf16 %v669_v6, %v668_v8  ;;  %v992_v13 = vpack.c.bf16 %v677_v7, %v676_v9  ;;  %v671_v16 = vmul.f32 %v1502_v32, %v1051_v10  ;;  %v679_v17 = vmul.f32 %v1158_v44, %v1063_v11 }
 0x111   : > { %v615_v14 = vpop.f32.mrf.mxu0  ;;  %v655_v15 = vpop.f32.mrf.mxu1 }
 0x112   : > { %1000 = vst [vmem:[%s1529_s25 + $0x10] sm:$0xff] %v972_v12   ;;  %1004 = vst [vmem:[%s1529_s25 + $0x30] sm:$0xff] %v992_v13   ;;  %v670_v18 = vmul.f32 %v1504_v35, %v615_v14  ;;  %v678_v19 = vmul.f32 %v1160_v45, %v655_v15 }
 0x114   : > { %v977_v20 = vpack.c.bf16 %v671_v16, %v670_v18  ;;  %v997_v21 = vpack.c.bf16 %v679_v17, %v678_v19 }
 0x116   : > { %1001 = vst [vmem:[%s1529_s25 + $0x18] sm:$0xff] %v977_v20   ;;  %1005 = vst [vmem:[%s1529_s25 + $0x38] sm:$0xff] %v997_v21  }
 0x117   : > { %1202 = shalt.err (!%p1199_p13)
}
 0x118   : > { %s1203_s8 = scalar_lea.hbm %s1550_s19, 1024  ;;  %s1207_s11 = scalar_lea.hbm %s1598_s4, 3072 }
 0x119   : > { %p1204_p1 = scmp.ne.s32.totalorder %s1550_s19, %s1203_s8  ;;  %p1208_p3 = scmp.lt.s32.totalorder %s1550_s19, %s1598_s4 }
 0x11a   : > { %p1209_p6 = scmp.lt.s32.totalorder %s1207_s11, %s1203_s8 }
 0x11b   : > { %p1205_p0 = pnand %p1204_p1, %p1606_p12 }
 0x11c   : > { %p1210_p10 = por %p1209_p6, %p1208_p3 }
 0x11d   : > { %p1206_p2 = pneg %p1205_p0 }
 0x11f   : > { %p1211_p11 = pnand %p1210_p10, %p1206_p2 }
 0x121   : > { %1214 = shalt.err (!%p1211_p11)
}
 0x122   : > { %s1259_s25 = smov 64   ;;  %s1260_s28 = smov 4  }
 0x123   : > { %1081 = dma.vmem_to_hbm [thread:$0]  (%p1606_p12), %s1541_s23, 1024, %s1550_s19, %s766_s5, %s1259_s25, %s1259_s25, %s1260_s28  }
 0x124 PF: > { %p1092_p4 = scmp.ge.s32.totalorder %s1253_s18, 2  ;;  %s806_s29 = sand.u32 1, %s1241_s15  }
 0x125   : > { %p1607_p5 = scmp.ne.s32.totalorder %s1603_s27, 0  ;;  %s807_s30 = scalar_lea.sflag [#allocation4], %s806_s29 }
 0x127   : > { %p1088_p7 = pnand %p1092_p4, %p1607_p5 }
 0x129   : > { %p1089_p8 = pneg %p1088_p7 }
 0x12b   : > { %1236 = dma.done.wait (%p1089_p8), %s807_s30, 1024  }
 0x12c   : > { %1238 = vsyncadd (%p1089_p8), %s807_s30, 4294966272  ;;  %p18_p9 = scmp.ge.s32.totalorder %s1311_s21, 5   ;;  %s1608_s15 = smov %s1245_s16 }
 0x12d   : > { %s1609_s16 = smov %s1249_s17  ;;  %s1610_s17 = smov %s1323_s24 }
 0x12e   : > { %s1611_s18 = smov %s1311_s21  ;;  %20 = sbr.rel (!%p18_p9) target bundleno = 5 (0x5), region = 92 }
 0x133   :  { %812 = vsyncpa [#allocation3], 1 }
 0x134   :  { %814 = vsyncpa [#allocation3 + $0x1], 1 }
 0x135   :  { %815 = vsyncpa [#allocation4], 1 }
 0x136   :  { %817 = vsyncpa [#allocation4 + $0x1], 1 }

</bundles_post_ra>
